<compile_context>
chip_gen: v7x
topology: tpu7x:2x2x1
jax: 0.10.0
libtpu: 0.0.40
codegen_flags: <defaults>
</compile_context>

<pallas_src>
import math

import jax
import jax.numpy as jnp
from jax.experimental import pallas as pl
from jax.experimental.pallas import tpu as pltpu


def _round_up(x, m):
    return (x + m - 1) // m * m


def mlp_kernel(x_ref,
               w1_ref, b1_ref,
               w2_ref, b2_ref,
               w3_ref, b3_ref,
               w4_ref, b4_ref,
               w5_ref, b5_ref,
               out_ref):
    """Fused 5-layer MLP forward on one (TB, din) batch tile.

    Matmul operands are bf16 (MXU), accumulation is f32, bias-add + ReLU run in
    f32 on the VPU. Final layer is a genuine (64 -> 1) dot; the (TB, 1) result is
    stored directly into the lane-1 output block.
    """
    x = x_ref[...].astype(jnp.bfloat16)   # f32 -> bf16 cast in-kernel (no extra HBM pass)

    h = jnp.dot(x, w1_ref[...], preferred_element_type=jnp.float32) + b1_ref[...]
    h = jnp.maximum(h, 0.0)

    h = jnp.dot(h.astype(jnp.bfloat16), w2_ref[...],
                preferred_element_type=jnp.float32) + b2_ref[...]
    h = jnp.maximum(h, 0.0)

    h = jnp.dot(h.astype(jnp.bfloat16), w3_ref[...],
                preferred_element_type=jnp.float32) + b3_ref[...]
    h = jnp.maximum(h, 0.0)

    h = jnp.dot(h.astype(jnp.bfloat16), w4_ref[...],
                preferred_element_type=jnp.float32) + b4_ref[...]
    h = jnp.maximum(h, 0.0)

    out_ref[...] = jnp.dot(h.astype(jnp.bfloat16), w5_ref[...],
                           preferred_element_type=jnp.float32) + b5_ref[...]


def _prepare_params(params):
    """Weights -> bf16 (MXU operands), biases -> f32 (1, n). No padding anywhere."""
    flat = []
    for w, b in params:
        flat.append(w.astype(jnp.bfloat16))
        flat.append(b.reshape(1, -1).astype(jnp.float32))
    return flat


def angle_prediction_forward(x, params, tb=2048):
    """x: (B, input_size) float32. params: list of (W, b) with W:(in,out), b:(1,out).

    Returns (B, 1) float32 predictions (same semantics as the PyTorch module's forward).
    """
    B, din = x.shape
    if B == 0:
        return jnp.zeros((0, 1), jnp.float32)

    # Balanced batch tile: target `tb` rows per tile, but split B evenly so the tail
    # block wastes at most 7 rows of compute. Pallas handles the partial last block
    # itself (valid region read/written, garbage rows discarded).
    tb_eff = max(8, min(tb, _round_up(B, 8)))
    num_tiles = pl.cdiv(B, tb_eff)
    TB = _round_up(pl.cdiv(B, num_tiles), 8)
    grid = (pl.cdiv(B, TB),)

    flat = _prepare_params(params)

    const_map = lambda i: (0, 0)   # weights/biases: same block every step -> VMEM-resident
    # x block: last dim == full array dim (legal even though din < 128); no HBM padding.
    in_specs = [pl.BlockSpec((TB, din), lambda i: (i, 0))]
    for a in flat:
        in_specs.append(pl.BlockSpec(a.shape, const_map))
    # (TB, 1) output block: last dim == full array dim; output HBM traffic is B*4 bytes.
    out_specs = pl.BlockSpec((TB, 1), lambda i: (i, 0))

    return pl.pallas_call(
        mlp_kernel,
        out_shape=jax.ShapeDtypeStruct((B, 1), jnp.float32),
        grid=grid,
        in_specs=in_specs,
        out_specs=out_specs,
        compiler_params=pltpu.CompilerParams(
            dimension_semantics=("parallel",),   # batch tiles are independent (megacore)
            vmem_limit_bytes=32 * 1024 * 1024,   # safe headroom on v5e/v6e/v7x
        ),
    )(x, *flat)


def init_params(key, input_size):
    """kaiming_uniform_(nonlinearity='relu') weights, zero biases — matches the
    module's self.apply(self.init_weights)."""
    dims = [input_size, 128, 256, 128, 64, 1]
    params = []
    for i in range(len(dims) - 1):
        fan_in, fan_out = dims[i], dims[i + 1]
        key, sub = jax.random.split(key)
        bound = math.sqrt(6.0 / fan_in)  # gain=sqrt(2), bound = gain*sqrt(3/fan_in)
        w = jax.random.uniform(sub, (fan_in, fan_out), dtype=jnp.float32,
                               minval=-bound, maxval=bound)
        b = jnp.zeros((1, fan_out), dtype=jnp.float32)
        params.append((w, b))
    return params


def reference_forward_f32(x, params):
    h = x
    for i, (w, b) in enumerate(params):
        h = h @ w + b
        if i < len(params) - 1:
            h = jnp.maximum(h, 0.0)
    return h


def reference_forward_bf16(x, params):
    """Mirrors the kernel's numerics: bf16 MXU operands, f32 accumulation, f32 bias/ReLU."""
    h = x.astype(jnp.bfloat16)
    for i, (w, b) in enumerate(params):
        h = jnp.dot(h, w.astype(jnp.bfloat16),
                    preferred_element_type=jnp.float32) + b
        if i < len(params) - 1:
            h = jnp.maximum(h, 0.0).astype(jnp.bfloat16)
    return h


if __name__ == "__main__":
    key = jax.random.PRNGKey(0)
    input_size = 32
    batch = 8

    k_x, k_p, k_x2 = jax.random.split(key, 3)
    x = jax.random.normal(k_x, (batch, input_size), dtype=jnp.float32)
    params = init_params(k_p, input_size)

    out = jax.block_until_ready(angle_prediction_forward(x, params))
    assert out.shape == (batch, 1), out.shape

    # Tight check vs a reference with identical (bf16-operand, f32-accum) numerics.
    ref_bf16 = reference_forward_bf16(x, params)
    assert jnp.allclose(out, ref_bf16, atol=2e-4, rtol=2e-4), "mismatch vs bf16 reference"

    # Loose check vs the pure-f32 module semantics (bf16 cast error only).
    ref_f32 = reference_forward_f32(x, params)
    assert jnp.allclose(out, ref_f32, atol=1e-1, rtol=1e-1), "mismatch vs f32 reference"

    # Exercise the multi-tile + partial-tail-block path (B not a multiple of TB).
    x_odd = jax.random.normal(k_x2, (300, input_size), dtype=jnp.float32)
    out_odd = jax.block_until_ready(angle_prediction_forward(x_odd, params, tb=128))
    assert out_odd.shape == (300, 1), out_odd.shape
    ref_odd = reference_forward_bf16(x_odd, params)
    assert jnp.allclose(out_odd, ref_odd, atol=2e-4, rtol=2e-4), "mismatch on tail-block case"

    print("KERNEL_OK")
</pallas_src>

<mosaic_0001>
module attributes {stable_mosaic.version = 11 : i64} {
  func.func @mlp_kernel(%arg0: i32, %arg1: memref<8x32xf32, #tpu.memory_space<vmem>>, %arg2: memref<32x128xbf16, #tpu.memory_space<vmem>>, %arg3: memref<1x128xf32, #tpu.memory_space<vmem>>, %arg4: memref<128x256xbf16, #tpu.memory_space<vmem>>, %arg5: memref<1x256xf32, #tpu.memory_space<vmem>>, %arg6: memref<256x128xbf16, #tpu.memory_space<vmem>>, %arg7: memref<1x128xf32, #tpu.memory_space<vmem>>, %arg8: memref<128x64xbf16, #tpu.memory_space<vmem>>, %arg9: memref<1x64xf32, #tpu.memory_space<vmem>>, %arg10: memref<64x1xbf16, #tpu.memory_space<vmem>>, %arg11: memref<1x1xf32, #tpu.memory_space<vmem>>, %arg12: memref<8x1xf32, #tpu.memory_space<vmem>>) attributes {dimension_semantics = [#tpu.dimension_semantics<parallel>], iteration_bounds = array<i64: 1>, scalar_prefetch = 0 : i64, scratch_operands = 0 : i64, tpu.core_type = #tpu.core_type<tc>, window_params = [{transform_indices = @transform_0, window_bounds = array<i64: 8, 32>}, {pipeline_mode = #tpu.pipeline_mode<synchronous>, transform_indices = @transform_1, window_bounds = array<i64: 32, 128>}, {pipeline_mode = #tpu.pipeline_mode<synchronous>, transform_indices = @transform_2, window_bounds = array<i64: 1, 128>}, {pipeline_mode = #tpu.pipeline_mode<synchronous>, transform_indices = @transform_3, window_bounds = array<i64: 128, 256>}, {pipeline_mode = #tpu.pipeline_mode<synchronous>, transform_indices = @transform_4, window_bounds = array<i64: 1, 256>}, {pipeline_mode = #tpu.pipeline_mode<synchronous>, transform_indices = @transform_5, window_bounds = array<i64: 256, 128>}, {pipeline_mode = #tpu.pipeline_mode<synchronous>, transform_indices = @transform_6, window_bounds = array<i64: 1, 128>}, {pipeline_mode = #tpu.pipeline_mode<synchronous>, transform_indices = @transform_7, window_bounds = array<i64: 128, 64>}, {pipeline_mode = #tpu.pipeline_mode<synchronous>, transform_indices = @transform_8, window_bounds = array<i64: 1, 64>}, {pipeline_mode = #tpu.pipeline_mode<synchronous>, transform_indices = @transform_9, window_bounds = array<i64: 64, 1>}, {pipeline_mode = #tpu.pipeline_mode<synchronous>, transform_indices = @transform_10, window_bounds = array<i64: 1, 1>}, {transform_indices = @transform_11, window_bounds = array<i64: 8, 1>}]} {
    %c0 = arith.constant 0 : index
    %c0_0 = arith.constant 0 : index
    %0 = vector.load %arg1[%c0, %c0_0] : memref<8x32xf32, #tpu.memory_space<vmem>>, vector<8x32xf32>
    %1 = arith.truncf %0 : vector<8x32xf32> to vector<8x32xbf16>
    %c0_1 = arith.constant 0 : index
    %c0_2 = arith.constant 0 : index
    %2 = vector.load %arg2[%c0_1, %c0_2] : memref<32x128xbf16, #tpu.memory_space<vmem>>, vector<32x128xbf16>
    %cst = arith.constant dense<0.000000e+00> : vector<8x128xf32>
    %3 = tpu.matmul %1, %2, %cst {dimension_numbers = #tpu.dot_dimension_numbers<[1], [0], [0], [1], [0, 0, 1, 1], [], []>} : vector<8x32xbf16>, vector<32x128xbf16>, vector<8x128xf32> -> vector<8x128xf32>
    %c0_3 = arith.constant 0 : index
    %c0_4 = arith.constant 0 : index
    %4 = vector.load %arg3[%c0_3, %c0_4] : memref<1x128xf32, #tpu.memory_space<vmem>>, vector<1x128xf32>
    %5 = vector.broadcast %4 : vector<1x128xf32> to vector<8x128xf32>
    %6 = arith.addf %3, %5 : vector<8x128xf32>
    %cst_5 = arith.constant 0.000000e+00 : f32
    %7 = vector.broadcast %cst_5 : f32 to vector<8x128xf32>
    %8 = arith.maximumf %6, %7 : vector<8x128xf32>
    %9 = arith.truncf %8 : vector<8x128xf32> to vector<8x128xbf16>
    %c0_6 = arith.constant 0 : index
    %c0_7 = arith.constant 0 : index
    %10 = vector.load %arg4[%c0_6, %c0_7] : memref<128x256xbf16, #tpu.memory_space<vmem>>, vector<128x256xbf16>
    %cst_8 = arith.constant dense<0.000000e+00> : vector<8x256xf32>
    %11 = tpu.matmul %9, %10, %cst_8 {dimension_numbers = #tpu.dot_dimension_numbers<[1], [0], [0], [1], [0, 0, 1, 1], [], []>} : vector<8x128xbf16>, vector<128x256xbf16>, vector<8x256xf32> -> vector<8x256xf32>
    %c0_9 = arith.constant 0 : index
    %c0_10 = arith.constant 0 : index
    %12 = vector.load %arg5[%c0_9, %c0_10] : memref<1x256xf32, #tpu.memory_space<vmem>>, vector<1x256xf32>
    %13 = vector.broadcast %12 : vector<1x256xf32> to vector<8x256xf32>
    %14 = arith.addf %11, %13 : vector<8x256xf32>
    %cst_11 = arith.constant 0.000000e+00 : f32
    %15 = vector.broadcast %cst_11 : f32 to vector<8x256xf32>
    %16 = arith.maximumf %14, %15 : vector<8x256xf32>
    %17 = arith.truncf %16 : vector<8x256xf32> to vector<8x256xbf16>
    %c0_12 = arith.constant 0 : index
    %c0_13 = arith.constant 0 : index
    %18 = vector.load %arg6[%c0_12, %c0_13] : memref<256x128xbf16, #tpu.memory_space<vmem>>, vector<256x128xbf16>
    %cst_14 = arith.constant dense<0.000000e+00> : vector<8x128xf32>
    %19 = tpu.matmul %17, %18, %cst_14 {dimension_numbers = #tpu.dot_dimension_numbers<[1], [0], [0], [1], [0, 0, 1, 1], [], []>} : vector<8x256xbf16>, vector<256x128xbf16>, vector<8x128xf32> -> vector<8x128xf32>
    %c0_15 = arith.constant 0 : index
    %c0_16 = arith.constant 0 : index
    %20 = vector.load %arg7[%c0_15, %c0_16] : memref<1x128xf32, #tpu.memory_space<vmem>>, vector<1x128xf32>
    %21 = vector.broadcast %20 : vector<1x128xf32> to vector<8x128xf32>
    %22 = arith.addf %19, %21 : vector<8x128xf32>
    %cst_17 = arith.constant 0.000000e+00 : f32
    %23 = vector.broadcast %cst_17 : f32 to vector<8x128xf32>
    %24 = arith.maximumf %22, %23 : vector<8x128xf32>
    %25 = arith.truncf %24 : vector<8x128xf32> to vector<8x128xbf16>
    %c0_18 = arith.constant 0 : index
    %c0_19 = arith.constant 0 : index
    %26 = vector.load %arg8[%c0_18, %c0_19] : memref<128x64xbf16, #tpu.memory_space<vmem>>, vector<128x64xbf16>
    %cst_20 = arith.constant dense<0.000000e+00> : vector<8x64xf32>
    %27 = tpu.matmul %25, %26, %cst_20 {dimension_numbers = #tpu.dot_dimension_numbers<[1], [0], [0], [1], [0, 0, 1, 1], [], []>} : vector<8x128xbf16>, vector<128x64xbf16>, vector<8x64xf32> -> vector<8x64xf32>
    %c0_21 = arith.constant 0 : index
    %c0_22 = arith.constant 0 : index
    %28 = vector.load %arg9[%c0_21, %c0_22] : memref<1x64xf32, #tpu.memory_space<vmem>>, vector<1x64xf32>
    %29 = vector.broadcast %28 : vector<1x64xf32> to vector<8x64xf32>
    %30 = arith.addf %27, %29 : vector<8x64xf32>
    %cst_23 = arith.constant 0.000000e+00 : f32
    %31 = vector.broadcast %cst_23 : f32 to vector<8x64xf32>
    %32 = arith.maximumf %30, %31 : vector<8x64xf32>
    %33 = arith.truncf %32 : vector<8x64xf32> to vector<8x64xbf16>
    %c0_24 = arith.constant 0 : index
    %c0_25 = arith.constant 0 : index
    %34 = vector.load %arg10[%c0_24, %c0_25] : memref<64x1xbf16, #tpu.memory_space<vmem>>, vector<64x1xbf16>
    %cst_26 = arith.constant dense<0.000000e+00> : vector<8x1xf32>
    %35 = tpu.matmul %33, %34, %cst_26 {dimension_numbers = #tpu.dot_dimension_numbers<[1], [0], [0], [1], [0, 0, 1, 1], [], []>} : vector<8x64xbf16>, vector<64x1xbf16>, vector<8x1xf32> -> vector<8x1xf32>
    %c0_27 = arith.constant 0 : index
    %c0_28 = arith.constant 0 : index
    %36 = vector.load %arg11[%c0_27, %c0_28] : memref<1x1xf32, #tpu.memory_space<vmem>>, vector<1x1xf32>
    %37 = vector.broadcast %36 : vector<1x1xf32> to vector<8x1xf32>
    %38 = arith.addf %35, %37 : vector<8x1xf32>
    %c0_29 = arith.constant 0 : index
    %c0_30 = arith.constant 0 : index
    %39 = vector.load %arg12[%c0_29, %c0_30] : memref<8x1xf32, #tpu.memory_space<vmem>>, vector<8x1xf32>
    tpu.vector_store %arg12[%c0_29, %c0_30], %38 {strides = array<i32>} : memref<8x1xf32, #tpu.memory_space<vmem>>, vector<8x1xf32>,
    return
  }
  func.func @transform_0(%arg0: i32) -> (i32, i32) {
    %c0_i32 = arith.constant 0 : i32
    %c0_i32_0 = arith.constant 0 : i32
    return %arg0, %c0_i32 : i32, i32
  }
  func.func @transform_1(%arg0: i32) -> (i32, i32) {
    %c0_i32 = arith.constant 0 : i32
    %c0_i32_0 = arith.constant 0 : i32
    %c0_i32_1 = arith.constant 0 : i32
    return %c0_i32, %c0_i32_0 : i32, i32
  }
  func.func @transform_2(%arg0: i32) -> (i32, i32) {
    %c0_i32 = arith.constant 0 : i32
    %c0_i32_0 = arith.constant 0 : i32
    %c0_i32_1 = arith.constant 0 : i32
    return %c0_i32, %c0_i32_0 : i32, i32
  }
  func.func @transform_3(%arg0: i32) -> (i32, i32) {
    %c0_i32 = arith.constant 0 : i32
    %c0_i32_0 = arith.constant 0 : i32
    %c0_i32_1 = arith.constant 0 : i32
    return %c0_i32, %c0_i32_0 : i32, i32
  }
  func.func @transform_4(%arg0: i32) -> (i32, i32) {
    %c0_i32 = arith.constant 0 : i32
    %c0_i32_0 = arith.constant 0 : i32
    %c0_i32_1 = arith.constant 0 : i32
    return %c0_i32, %c0_i32_0 : i32, i32
  }
  func.func @transform_5(%arg0: i32) -> (i32, i32) {
    %c0_i32 = arith.constant 0 : i32
    %c0_i32_0 = arith.constant 0 : i32
    %c0_i32_1 = arith.constant 0 : i32
    return %c0_i32, %c0_i32_0 : i32, i32
  }
  func.func @transform_6(%arg0: i32) -> (i32, i32) {
    %c0_i32 = arith.constant 0 : i32
    %c0_i32_0 = arith.constant 0 : i32
    %c0_i32_1 = arith.constant 0 : i32
    return %c0_i32, %c0_i32_0 : i32, i32
  }
  func.func @transform_7(%arg0: i32) -> (i32, i32) {
    %c0_i32 = arith.constant 0 : i32
    %c0_i32_0 = arith.constant 0 : i32
    %c0_i32_1 = arith.constant 0 : i32
    return %c0_i32, %c0_i32_0 : i32, i32
  }
  func.func @transform_8(%arg0: i32) -> (i32, i32) {
    %c0_i32 = arith.constant 0 : i32
    %c0_i32_0 = arith.constant 0 : i32
    %c0_i32_1 = arith.constant 0 : i32
    return %c0_i32, %c0_i32_0 : i32, i32
  }
  func.func @transform_9(%arg0: i32) -> (i32, i32) {
    %c0_i32 = arith.constant 0 : i32
    %c0_i32_0 = arith.constant 0 : i32
    %c0_i32_1 = arith.constant 0 : i32
    return %c0_i32, %c0_i32_0 : i32, i32
  }
  func.func @transform_10(%arg0: i32) -> (i32, i32) {
    %c0_i32 = arith.constant 0 : i32
    %c0_i32_0 = arith.constant 0 : i32
    %c0_i32_1 = arith.constant 0 : i32
    return %c0_i32, %c0_i32_0 : i32, i32
  }
  func.func @transform_11(%arg0: i32) -> (i32, i32) {
    %c0_i32 = arith.constant 0 : i32
    %c0_i32_0 = arith.constant 0 : i32
    return %arg0, %c0_i32 : i32, i32
  }
}

</mosaic_0001>

<bundles_post_ra>
// kernel: tpu_custom_call.1
= control target key start
LH: loop header
LB: loop body
LE: loop exit
PB: predicated region body
PF: predicated region fallthrough
CT: control target
= control target key end

     0   :  { %s1175_s0 = inlined_call_operand.hbm [shape: f32[8,32], index: 0, kind: input, shape index: {}]   ;;  %s1176_s1 = inlined_call_operand.vmem [shape: bf16[32,128], index: 1, kind: input, shape index: {}]   ;;  %s1177_s2 = inlined_call_operand.hbm [shape: f32[1,128], index: 2, kind: input, shape index: {}]   ;;  %s1178_s3 = inlined_call_operand.vmem [shape: bf16[128,256], index: 3, kind: input, shape index: {}]   ;;  %s1179_s4 = inlined_call_operand.vmem [shape: f32[1,256], index: 4, kind: input, shape index: {}]   ;;  %s1180_s5 = inlined_call_operand.hbm [shape: bf16[256,128], index: 5, kind: input, shape index: {}]   ;;  %s1181_s6 = inlined_call_operand.vmem [shape: f32[1,128], index: 6, kind: input, shape index: {}]   ;;  %s1182_s7 = inlined_call_operand.vmem [shape: bf16[128,64], index: 7, kind: input, shape index: {}]   ;;  %s1183_s8 = inlined_call_operand.vmem [shape: f32[1,64], index: 8, kind: input, shape index: {}]   ;;  %s1184_s9 = inlined_call_operand.vmem [shape: bf16[64,1], index: 9, kind: input, shape index: {}]   ;;  %s1185_s10 = inlined_call_operand.<no memory space> [shape: f32[1,1], index: 10, kind: input, shape index: {}]   ;;  %s1186_s11 = inlined_call_operand.vmem [shape: f32[8,1], index: 11, kind: output, shape index: {}]  }
   0x1   :  { %v16_v0 = vstv %s1185_s10 }
   0x2   :  { %17 = vst [vmem:[#allocation2] sm:$0x1] %v16_v0 }
   0x3   :  { %18 = vsyncpa [#allocation4], 0 }
   0x4   :  { %19 = vsyncpa [#allocation6], 0  ;;  %s946_s19 = smov [#allocation5]   ;;  %s947_s21 = smov [#allocation3]  }
   0x5   :  { %s38_s20 = sshll.u32 %s946_s19, 4  ;;  %s26_s22 = sshll.u32 %s947_s21, 4  ;;  %s39_s20 = int_to_ptr.vmem [resolvable:$true] %s38_s20  ;;  %s27_s22 = int_to_ptr.vmem [resolvable:$true] %s26_s22 }
   0x6   :  { %s876_s25 = scalar_lea.hbm %s1177_s2, 16 }
   0x7   :  { %p877_p0 = scmp.ne.s32.totalorder %s1177_s2, %s876_s25  ;;  %p880_p1 = scmp.lt.u32.totalorder %s876_s25, %s1177_s2 }
   0x9   :  { %p882_p2 = pnand %p880_p1, %p877_p0 }
   0xb   :  { %885 = shalt.err (!%p882_p2)
}
   0xc   :  { %s886_s10 = scalar_lea.vmem %s39_s20, 16  ;;  %s890_s30 = scalar_lea.vmem %s39_s20, 32 }
   0xd   :  { %p887_p3 = scmp.ne.s32.totalorder %s39_s20, %s886_s10  ;;  %p891_p4 = scmp.lt.s32.totalorder %s39_s20, %s39_s20 }
   0xe   :  { %p892_p5 = scmp.lt.s32.totalorder %s890_s30, %s886_s10 }
  0x10   :  { %p893_p6 = por %p892_p5, %p891_p4 }
  0x12   :  { %p894_p7 = pnand %p893_p6, %p887_p3 }
  0x14   :  { %897 = shalt.err (!%p894_p7)
}
  0x15   :  { %41 = dma.hbm_to_vmem [thread:$0]  %s1177_s2, 16, %s39_s20, [#allocation6]  }
  0x16   :  { %s898_s16 = scalar_lea.hbm %s1175_s0, 128 }
  0x17   :  { %p899_p8 = scmp.ne.s32.totalorder %s1175_s0, %s898_s16  ;;  %p902_p9 = scmp.lt.u32.totalorder %s898_s16, %s1175_s0 }
  0x19   :  { %p904_p10 = pnand %p902_p9, %p899_p8 }
  0x1b   :  { %907 = shalt.err (!%p904_p10)
}
  0x1c   :  { %s908_s23 = scalar_lea.vmem %s27_s22, 128  ;;  %p913_p12 = scmp.lt.s32.totalorder %s27_s22, %s27_s22 }
  0x1d   :  { %p909_p11 = scmp.ne.s32.totalorder %s27_s22, %s908_s23  ;;  %p914_p13 = scmp.lt.s32.totalorder %s908_s23, %s908_s23 }
  0x1f   :  { %p915_p0 = por %p914_p13, %p913_p12 }
  0x21   :  { %p916_p1 = pnand %p915_p0, %p909_p11 }
  0x23   :  { %919 = shalt.err (!%p916_p1)
}
  0x24   :  { %29 = dma.hbm_to_vmem [thread:$0]  %s1175_s0, 128, %s27_s22, [#allocation4]  }
  0x25   :  { %s948_s24 = smov [#allocation7]   ;;  %s920_s28 = scalar_lea.hbm %s1180_s5, 2048 }
  0x26   :  { %s51_s25 = sshll.u32 %s948_s24, 4  ;;  %p921_p2 = scmp.ne.s32.totalorder %s1180_s5, %s920_s28  ;;  %s52_s25 = int_to_ptr.vmem [resolvable:$true] %s51_s25 }
  0x27   :  { %p924_p3 = scmp.lt.u32.totalorder %s920_s28, %s1180_s5 }
  0x29   :  { %p926_p4 = pnand %p924_p3, %p921_p2 }
  0x2b   :  { %929 = shalt.err (!%p926_p4)
}
  0x2c   :  { %s930_s13 = scalar_lea.vmem %s52_s25, 2048  ;;  %p935_p6 = scmp.lt.s32.totalorder %s52_s25, %s52_s25 }
  0x2d   :  { %p931_p5 = scmp.ne.s32.totalorder %s52_s25, %s930_s13  ;;  %p936_p7 = scmp.lt.s32.totalorder %s930_s13, %s930_s13 }
  0x2f   :  { %p937_p8 = por %p936_p7, %p935_p6 }
  0x31   :  { %p938_p9 = pnand %p937_p8, %p931_p5 }
  0x33   :  { %941 = shalt.err (!%p938_p9)
}
  0x34   :  { %s949_s0 = smov 64   ;;  %s950_s22 = smov 4  }
  0x35   :  { %57 = dma.hbm_to_vmem [thread:$0]  %s1180_s5, 2048, %s52_s25, [#allocation6], %s949_s0, %s949_s0, %s950_s22  }
  0x36   :  { %942 = dma.done.wait [#allocation4], 128  }
  0x37   :  { %943 = vsyncadd [#allocation4], 4294967168 }
  0x38   :  { %944 = dma.done.wait [#allocation6], 2064  }
  0x39   :  { %945 = vsyncadd [#allocation6], 4294965232  ;;  %v951_v1 = vmov 0.0   ;;  %vm952_vm0 = vmmov 0   ;;  %v822_v2 = vld [vmem:[%s1176_s1] sm:$0xff]   ;;  %v823_v3 = vld [vmem:[%s1176_s1 + $0x8] sm:$0xff]   ;;  %v167_v53 = vlaneseq }
  0x3a   :  { %774 = vmatprep.subr.bf16.mxu0 %v951_v1  ;;  %778 = vmatprep.mubr.msk.bf16.mxu0 %vm952_vm0, %v951_v1  ;;  %v78_v4 = vld [vmem:[#allocation3] sm:$0xff]  ;;  %v827_v7 = vld [vmem:[%s1178_s3 + $0x14] ss:$8 sps:$4 sm:$0xff]   ;;  %vm103_vm1 = vcmask 261120   ;;  %v829_v9 = vld [vmem:[%s1178_s3 + $0x10] ss:$8 sps:$4 sm:$0xff]  }
  0x3b   :  { %775 = vmatpush3.bf16.msra.mxu0 %v822_v2  ;;  %v824_v5 = vld [vmem:[%s1178_s3 + $0x4] ss:$8 sps:$4 sm:$0xff]   ;;  %v826_v6 = vld [vmem:[%s1178_s3] ss:$8 sps:$4 sm:$0xff]   ;;  %v79_v8 = vpack.c.bf16 %v78_v4, %v78_v4  ;;  %v833_v12 = vld [vmem:[%s1178_s3 + $0x34] ss:$8 sps:$4 sm:$0xff]  }
  0x3c   :  { %776 = vmatprep.subr.bf16.mxu0 %v951_v1  ;;  %257 = vmatprep.subr.bf16.mxu1 %v824_v5  ;;  %v830_v10 = vld [vmem:[%s1178_s3 + $0x24] ss:$8 sps:$4 sm:$0xff]   ;;  %v832_v11 = vld [vmem:[%s1178_s3 + $0x20] ss:$8 sps:$4 sm:$0xff]   ;;  %v835_v13 = vld [vmem:[%s1178_s3 + $0x30] ss:$8 sps:$4 sm:$0xff]  }
  0x3d   :  { %258 = vmatpush1.bf16.msra.mxu1 %v826_v6  ;;  %v836_v14 = vld [vmem:[%s1178_s3 + $0x44] ss:$8 sps:$4 sm:$0xff]   ;;  %v838_v15 = vld [vmem:[%s1178_s3 + $0x40] ss:$8 sps:$4 sm:$0xff]   ;;  %v839_v16 = vld [vmem:[%s1178_s3 + $0x54] ss:$8 sps:$4 sm:$0xff]  }
  0x3e   :  { %259 = vmatprep.subr.bf16.mxu1 %v827_v7  ;;  %v841_v17 = vld [vmem:[%s1178_s3 + $0x50] ss:$8 sps:$4 sm:$0xff]   ;;  %v842_v18 = vld [vmem:[%s1178_s3 + $0x64] ss:$8 sps:$4 sm:$0xff]   ;;  %v844_v19 = vld [vmem:[%s1178_s3 + $0x60] ss:$8 sps:$4 sm:$0xff]  }
  0x3f   :  { %777 = vmatpush3.bf16.msra.mxu0 %v823_v3  ;;  %v845_v20 = vld [vmem:[%s1178_s3 + $0x74] ss:$8 sps:$4 sm:$0xff]   ;;  %v847_v21 = vld [vmem:[%s1178_s3 + $0x70] ss:$8 sps:$4 sm:$0xff]   ;;  %v953_v22 = vmov 0   ;;  %v854_v29 = vld [vmem:[#allocation7 + $0x58] sm:$0xff]  }
  0x40   :  { %289 = vmatprep.mubr.bf16.mxu1 %v953_v22  ;;  %v848_v23 = vld [vmem:[#allocation7 + $0x40] sm:$0xff]   ;;  %v850_v25 = vld [vmem:[#allocation7 + $0x48] sm:$0xff]   ;;  %v852_v27 = vld [vmem:[#allocation7 + $0x50] sm:$0xff]   ;;  %v168_v54 = vshrl.u32 %v167_v53, 7  ;;  %vm631_vm2 = vcmask 523264   ;;  %vm675_vm3 = vcmask 7168  }
  0x41   :  { %260 = vmatpush1.bf16.msra.mxu1 %v829_v9  ;;  %v849_v24 = vld [vmem:[#allocation7] sm:$0xff]   ;;  %738 = vmatprep.subr.bf16.mxu0 %v848_v23  ;;  %v851_v26 = vld [vmem:[#allocation7 + $0x8] sm:$0xff]   ;;  %v853_v28 = vld [vmem:[#allocation7 + $0x10] sm:$0xff]  }
  0x42   :  { %779 = vmatmul.mubr.msk.bf16.vlgmr.msra.gmra.mrb[0].mxu0 %vm103_vm1, %v79_v8  ;;  %261 = vmatprep.subr.bf16.mxu1 %v830_v10  ;;  %v855_v30 = vld [vmem:[#allocation7 + $0x18] sm:$0xff]   ;;  %v856_v31 = vld [vmem:[#allocation7 + $0x60] sm:$0xff]   ;;  %v858_v33 = vld [vmem:[#allocation7 + $0x68] sm:$0xff]   ;;  %v169_v55 = vsub.s32 0, %v168_v54  ;;  %v173_v57 = vsub.s32 1, %v168_v54 }
  0x43   :  { %739 = vmatpush3.bf16.msra.mxu0 %v849_v24  ;;  %v857_v32 = vld [vmem:[#allocation7 + $0x20] sm:$0xff]   ;;  %v859_v34 = vld [vmem:[#allocation7 + $0x28] sm:$0xff]   ;;  %v683_v35 = vld [vmem:[#allocation5] ss:$0 sm:$0xff] }
  0x44   :  { %740 = vmatprep.subr.bf16.mxu0 %v850_v25  ;;  %v860_v43 = vld [vmem:[#allocation7 + $0x70] sm:$0xff]   ;;  %v862_v45 = vld [vmem:[#allocation7 + $0x78] sm:$0xff]   ;;  %v866_v49 = vld [vmem:[%s1182_s7 + $0x10] sm:$0xff]  }
  0x45   :  { %262 = vmatpush1.bf16.msra.mxu1 %v832_v11  ;;  %v861_v44 = vld [vmem:[#allocation7 + $0x30] sm:$0xff]   ;;  %v863_v46 = vld [vmem:[#allocation7 + $0x38] sm:$0xff]   ;;  %v870_v7 = vld [vmem:[%s1182_s7 + $0x30] sm:$0xff]  }
  0x46   :  { %263 = vmatprep.subr.bf16.mxu1 %v833_v12  ;;  %v864_v47 = vld [vmem:[%s1182_s7] sm:$0xff]   ;;  %v865_v48 = vld [vmem:[%s1182_s7 + $0x8] sm:$0xff]   ;;  %v867_v50 = vld [vmem:[%s1182_s7 + $0x18] sm:$0xff]  }
  0x47   :  { %741 = vmatpush3.bf16.msra.mxu0 %v851_v26  ;;  %v868_v51 = vld [vmem:[%s1182_s7 + $0x20] sm:$0xff]   ;;  %v869_v52 = vld [vmem:[%s1182_s7 + $0x28] sm:$0xff]   ;;  %v871_v8 = vld [vmem:[%s1182_s7 + $0x38] sm:$0xff]  }
  0x48   :  { %742 = vmatprep.subr.bf16.mxu0 %v852_v27  ;;  %v165_v56 = vld [vmem:[%s1179_s4] sm:$0x3]  ;;  %v873_v10 = vld [vmem:[%s1184_s9 + $0x8] sm:$0xff]  }
  0x49   :  { %264 = vmatpush1.bf16.msra.mxu1 %v835_v13  ;;  %v170_v58 = vrot.slane %v165_v56, %v169_v55  ;;  %v174_v59 = vrot.slane %v165_v56, %v173_v57  ;;  %v872_v9 = vld [vmem:[%s1184_s9] sm:$0xff]  }
  0x4a   :  { %265 = vmatprep.subr.bf16.mxu1 %v836_v14  ;;  %v703_v12 = vld [vmem:[%s1181_s6] ss:$0 sm:$0xff] }
  0x4b   :  { %743 = vmatpush3.bf16.msra.mxu0 %v853_v28  ;;  %v720_v22 = vld [vmem:[%s1183_s8] ss:$0 sm:$0xff] }
  0x4c   :  { %744 = vmatprep.subr.bf16.mxu0 %v854_v29 }
  0x4d   :  { %266 = vmatpush1.bf16.msra.mxu1 %v838_v15 }
  0x4e   :  { %267 = vmatprep.subr.bf16.mxu1 %v839_v16 }
  0x4f   :  { %745 = vmatpush3.bf16.msra.mxu0 %v855_v30  ;;  %v729_v30 = vld [vmem:[#allocation2] ss:$0 sm:$0xff] }
  0x50   :  { %746 = vmatprep.subr.bf16.mxu0 %v856_v31 }
  0x51   :  { %268 = vmatpush1.bf16.msra.mxu1 %v841_v17 }
  0x52   :  { %269 = vmatprep.subr.bf16.mxu1 %v842_v18 }
  0x53   :  { %747 = vmatpush3.bf16.msra.mxu0 %v857_v32 }
  0x54   :  { %748 = vmatprep.subr.bf16.mxu0 %v858_v33 }
  0x55   :  { %270 = vmatpush1.bf16.msra.mxu1 %v844_v19 }
  0x56   :  { %271 = vmatprep.subr.bf16.mxu1 %v845_v20  ;;  %v874_v20 = vld [vmem:[%s1184_s9 + $0x10] sm:$0xff]  }
  0x57   :  { %749 = vmatpush3.bf16.msra.mxu0 %v859_v34 }
  0x58   :  { %750 = vmatprep.subr.bf16.mxu0 %v860_v43 }
  0x59   :  { %272 = vmatpush1.bf16.msra.mxu1 %v847_v21  ;;  %v875_v21 = vld [vmem:[%s1184_s9 + $0x18] sm:$0xff]  }
  0x5a   :  { %782 = vmatprep.subr.bf16.mxu1 %v951_v1 }
  0x5b   :  { %751 = vmatpush3.bf16.msra.mxu0 %v861_v44 }
  0x5c   :  { %752 = vmatprep.subr.bf16.mxu0 %v862_v45 }
  0x5f   :  { %753 = vmatpush3.bf16.msra.mxu0 %v863_v46 }
  0x60   :  { %802 = vmatprep.subr.bf16.mxu0 %v951_v1 }
 0x115   :  { %v141_v36 = vpop.f32.mrb[0].mxu0 }
 0x116   :  { %v142_v37 = vadd.f32 %v683_v35, %v141_v36  ;;  %v780_v38 = vpop.f32.mrb[1].mxu0 }
 0x117   :  { %v144_v39 = vpop.f32.mrb[2].mxu0 }
 0x118   :  { %v147_v40 = vmax.f32 %v142_v37, 0.0  ;;  %v781_v41 = vpop.f32.mrb[3].mxu0 }
 0x11a   :  { %v148_v42 = vpack.c.bf16 %v147_v40, %v147_v40 }
 0x11c   :  { %290 = vmatmul.mubr.bf16.vlgmr.msra.gmra.mrb[0].mxu1 %v148_v42 }
 0x11d   :  { %798 = vmatprep.mubr.msk.bf16.mxu1 %vm952_vm0, %v951_v1  ;;  %783 = vmatpush3.bf16.msra.mxu1 %v864_v47 }
 0x11e   :  { %784 = vmatprep.subr.bf16.mxu1 %v951_v1 }
 0x121   :  { %785 = vmatpush3.bf16.msra.mxu1 %v865_v48 }
 0x122   :  { %786 = vmatprep.subr.bf16.mxu1 %v951_v1 }
 0x125   :  { %787 = vmatpush3.bf16.msra.mxu1 %v866_v49 }
 0x126   :  { %788 = vmatprep.subr.bf16.mxu1 %v951_v1 }
 0x129   :  { %789 = vmatpush3.bf16.msra.mxu1 %v867_v50 }
 0x12a   :  { %790 = vmatprep.subr.bf16.mxu1 %v951_v1 }
 0x12d   :  { %791 = vmatpush3.bf16.msra.mxu1 %v868_v51 }
 0x12e   :  { %792 = vmatprep.subr.bf16.mxu1 %v951_v1 }
 0x131   :  { %793 = vmatpush3.bf16.msra.mxu1 %v869_v52 }
 0x132   :  { %794 = vmatprep.subr.bf16.mxu1 %v951_v1 }
 0x135   :  { %795 = vmatpush3.bf16.msra.mxu1 %v870_v7 }
 0x136   :  { %796 = vmatprep.subr.bf16.mxu1 %v951_v1 }
 0x139   :  { %797 = vmatpush3.bf16.msra.mxu1 %v871_v8 }
 0x1ef   :  { %v291_v60 = vpop.f32.mrb[0].mxu1 }
 0x1f0   :  { %v292_v61 = vadd.f32 %v291_v60, %v170_v58  ;;  %v293_v62 = vpop.f32.mrb[1].mxu1 }
 0x1f1   :  { %v294_v63 = vadd.f32 %v293_v62, %v174_v59  ;;  %v295_v0 = vpop.f32.mrb[2].mxu1 }
 0x1f2   :  { %v298_v2 = vmax.f32 %v292_v61, 0.0  ;;  %v296_v3 = vpop.f32.mrb[3].mxu1 }
 0x1f3   :  { %v299_v4 = vmax.f32 %v294_v63, 0.0 }
 0x1f4   :  { %v300_v6 = vpack.c.bf16 %v298_v2, %v298_v2 }
 0x1f5   :  { %v301_v5 = vpack.c.bf16 %v299_v4, %v299_v4 }
 0x1f7   :  { %469 = vmatprep.mubr.bf16.mxu0 %v301_v5 }
 0x1f8   :  { %470 = vmatmul.mubr.bf16.vlgmr.msra.gmra.mrb[4].mxu0 %v300_v6 }
 0x1f9   :  { %810 = vmatprep.mubr.msk.bf16.mxu0 %vm952_vm0, %v951_v1  ;;  %803 = vmatpush3.bf16.msra.mxu0 %v872_v9 }
 0x1fa   :  { %804 = vmatprep.subr.bf16.mxu0 %v951_v1 }
 0x1fd   :  { %805 = vmatpush3.bf16.msra.mxu0 %v873_v10 }
 0x1fe   :  { %806 = vmatprep.subr.bf16.mxu0 %v951_v1 }
 0x201   :  { %807 = vmatpush3.bf16.msra.mxu0 %v874_v20 }
 0x202   :  { %808 = vmatprep.subr.bf16.mxu0 %v951_v1 }
 0x205   :  { %809 = vmatpush3.bf16.msra.mxu0 %v875_v21 }
 0x2cb   :  { %v754_v11 = vpop.f32.mrb[4].mxu0 }
 0x2cc   :  { %v755_v13 = vpop.f32.mrb[5].mxu0 }
 0x2cd   :  { %v756_v14 = vadd.f32 %v755_v13, %v754_v11  ;;  %v757_v15 = vpop.f32.mrb[6].mxu0 }
 0x2ce   :  { %v758_v16 = vpop.f32.mrb[7].mxu0 }
 0x2cf   :  { %v472_v17 = vadd.f32 %v756_v14, %v703_v12 }
 0x2d1   :  { %v477_v18 = vmax.f32 %v472_v17, 0.0 }
 0x2d3   :  { %v478_v19 = vpack.c.bf16 %v477_v18, %v477_v18 }
 0x2d5   :  { %799 = vmatmul.mubr.bf16.vlgmr.msra.gmra.mrb[4].mxu1 %v478_v19 }
 0x3a8   :  { %v584_v23 = vpop.f32.mrb[4].mxu1 }
 0x3a9   :  { %v585_v24 = vadd.f32 %v720_v22, %v584_v23  ;;  %v800_v25 = vpop.f32.mrb[5].mxu1 }
 0x3aa   :  { %v587_v26 = vpop.f32.mrb[6].mxu1 }
 0x3ab   :  { %v590_v27 = vmax.f32 %v585_v24, 0.0  ;;  %v801_v28 = vpop.f32.mrb[7].mxu1 }
 0x3ad   :  { %v591_v29 = vpack.c.bf16 %v590_v27, %v590_v27 }
 0x3af   :  { %811 = vmatmul.mubr.msk.bf16.vlgmr.msra.gmra.mrb[8].mxu0 %vm631_vm2, %v591_v29 }
 0x482   :  { %v669_v1 = vpop.f32.mrb[8].mxu0 }
 0x483   :  { %v670_v31 = vadd.f32 %v729_v30, %v669_v1  ;;  %v812_v32 = vpop.f32.mrb[9].mxu0 }
 0x484   :  { %v672_v33 = vpop.f32.mrb[10].mxu0 }
 0x485   :  { %676 = vst.msk [vmem:[%s1186_s11] sm:$0xff] %vm675_vm3, %v670_v31  ;;  %v813_v34 = vpop.f32.mrb[11].mxu0 }
 0x486   :  { %681 = vsyncpa [#allocation4], 1 }
 0x487   :  { %682 = vsyncpa [#allocation6], 1 }

</bundles_post_ra>
